<compile_context>
chip_gen: v7x
topology: tpu7x:2x2x1
jax: 0.10.0
libtpu: 0.0.40
codegen_flags: <defaults>
</compile_context>

<pallas_src>
import functools

import jax
import jax.numpy as jnp
from jax.experimental import pallas as pl
from jax.experimental.pallas import tpu as pltpu

N_EMBED = 384      # module's n_embed
BLOCK_SIZE = 256   # module's block_size (T must be <= this)


# ---------------------------------------------------------------------------
# Fused kernel: per grid step (b, qi) it projects q/k/v on-chip from the
# VMEM-resident padded weight slab and performs causal softmax attention for
# one q-tile against the whole key range.
# ---------------------------------------------------------------------------
def _fused_head_kernel(x_ref, w_ref, o_ref, *, nq):
    # x_ref: (1, T, C) bf16 ; w_ref: (C, 3P) bf16 (P = 128-padded head) ; o_ref: (1, tq, H) f32
    T = x_ref.shape[1]
    tq = o_ref.shape[1]
    H = o_ref.shape[2]
    P = w_ref.shape[1] // 3

    x_all = x_ref[0]          # (T, C) bf16 — full sequence (keys/values)
    w = w_ref[...]            # (C, 3P) bf16 — resident across the grid

    if nq == 1:
        # One big fused projection matmul: (T, C) @ (C, 3P), f32 MXU accumulation.
        q_start = 0
        qkv = jnp.dot(x_all, w, preferred_element_type=jnp.float32).astype(jnp.bfloat16)
        q = qkv[:, :P]                    # vreg-aligned lane slices (0 / P / 2P)
        k = qkv[:, P:2 * P]
        v = qkv[:, 2 * P:]
    else:
        # B == 1 megacore path: project q only for this q-tile, k/v for all rows.
        qi = pl.program_id(1)
        q_start = pl.multiple_of(qi * tq, tq)
        x_q = x_ref[0, pl.ds(q_start, tq), :]                       # (tq, C) bf16
        q = jnp.dot(x_q, w[:, :P],
                    preferred_element_type=jnp.float32).astype(jnp.bfloat16)
        kv = jnp.dot(x_all, w[:, P:],
                     preferred_element_type=jnp.float32).astype(jnp.bfloat16)
        k = kv[:, :P]
        v = kv[:, P:]

    # scores = q @ k^T (contract last dims, no materialized transpose);
    # C**-0.5 already folded into the q-section of w; zero-padded lanes contribute 0.
    s = jax.lax.dot_general(q, k, (((1,), (1,)), ((), ())),
                            preferred_element_type=jnp.float32)     # (tq, T) f32

    # causal mask from broadcast row/col iotas (no (T,T) iota tensors)
    row = q_start + jax.lax.broadcasted_iota(jnp.int32, (tq, 1), 0)
    col = jax.lax.broadcasted_iota(jnp.int32, (1, T), 1)
    s = jnp.where(col <= row, s, -jnp.inf)

    # one-shot softmax in f32 (tk = T -> no online-softmax rescale needed)
    m = jnp.max(s, axis=-1, keepdims=True)
    p = jnp.exp(s - m)
    l = jnp.sum(p, axis=-1, keepdims=True)

    # TODO(synk): training-mode dropout (p=0.2) on the attention weights omitted
    # (identity == eval mode).

    out = jnp.dot(p.astype(jnp.bfloat16), v, preferred_element_type=jnp.float32)
    # Exact normalization (once per q-tile, negligible cost).
    o_ref[0] = (out[:, :H] / l).astype(o_ref.dtype)
    # TODO(synk): single-head output width H=64 (<128 lanes) -> masked store; fusing
    # all heads of a layer into one call would make this lane-dense, but that is
    # outside this single-Head module's contract.


@jax.jit
def head_forward(x, wq, wk, wv):
    """x: (B, T, C) f32; wq/wk/wv: (C, H) f32 (transposed nn.Linear weights)."""
    B, T, C = x.shape
    H = wq.shape[1]
    assert T <= BLOCK_SIZE and C == wq.shape[0]

    # Pad each head section to a multiple of 128 lanes so q/k/v slices are
    # vreg-aligned; zero columns are exact (contribute nothing to q.k^T or p@v).
    P = ((H + 127) // 128) * 128
    pad = P - H

    # Fold the module's C**-0.5 score scale into Wq (exact; scales C*H weights once
    # instead of T*T scores every step).
    parts = []
    for wpart in (wq * (C ** -0.5), wk, wv):
        if pad:
            wpart = jnp.concatenate([wpart, jnp.zeros((C, pad), wpart.dtype)], axis=1)
        parts.append(wpart)
    w_qkv = jnp.concatenate(parts, axis=1).astype(jnp.bfloat16)      # (C, 3P) bf16

    # bf16 input cast done in the wrapper: halves x HBM->VMEM bytes, removes
    # per-step VPU casts inside the kernel. Accuracy unchanged (MXU runs bf16).
    x_bf16 = x.astype(jnp.bfloat16)

    # Grid: (B, nq). Workload is overhead-bound, so keep the grid minimal;
    # with B == 1 split the q axis in two so v7x's second TensorCore gets work.
    if B >= 2:
        nq = 1
    elif T % 16 == 0:
        nq = 2
    else:
        nq = 1
    tq = T // nq

    cost = pl.CostEstimate(
        flops=2 * B * T * C * 3 * P + 2 * 2 * B * T * T * P,         # proj + scores + p@v
        transcendentals=B * T * T,                                    # softmax exp
        bytes_accessed=B * T * C * 2 + C * 3 * P * 2 + B * T * H * 4,
    )

    out = pl.pallas_call(
        functools.partial(_fused_head_kernel, nq=nq),
        out_shape=jax.ShapeDtypeStruct((B, T, H), jnp.float32),
        grid_spec=pltpu.PrefetchScalarGridSpec(
            num_scalar_prefetch=0,
            grid=(B, nq),
            in_specs=[
                pl.BlockSpec((1, T, C), lambda b, qi: (b, 0, 0)),      # full sequence x[b]
                pl.BlockSpec((C, 3 * P), lambda b, qi: (0, 0)),        # resident padded W_qkv
            ],
            out_specs=pl.BlockSpec((1, tq, H), lambda b, qi: (b, qi, 0)),
        ),
        compiler_params=pltpu.CompilerParams(
            dimension_semantics=("parallel", "parallel")),
        cost_estimate=cost,
    )(x_bf16, w_qkv)
    return out


def reference_head(x, wq, wk, wv):
    """Plain-JAX f32 reference mirroring the PyTorch forward (eval-mode dropout)."""
    B, T, C = x.shape
    hp = jax.lax.Precision.HIGHEST
    q = jnp.einsum("btc,ch->bth", x, wq, precision=hp)
    k = jnp.einsum("btc,ch->bth", x, wk, precision=hp)
    v = jnp.einsum("btc,ch->bth", x, wv, precision=hp)
    w = jnp.einsum("bth,bsh->bts", q, k, precision=hp) * (C ** -0.5)
    mask = jnp.tril(jnp.ones((T, T), dtype=bool))
    w = jnp.where(mask[None, :, :], w, -jnp.inf)
    w = jax.nn.softmax(w, axis=-1)
    return jnp.einsum("bts,bsh->bth", w, v, precision=hp)


if __name__ == "__main__":
    B, T, C = 2, 16, N_EMBED   # T=16 << block_size; C must equal n_embed
    head_size = 64

    key = jax.random.PRNGKey(0)
    kx, kq, kk, kv = jax.random.split(key, 4)

    x = jax.random.normal(kx, (B, T, C), dtype=jnp.float32)
    # Deterministic "Linear(bias=False)" weights, stored as (C, H) = W^T.
    init = 1.0 / (C ** 0.5)
    wq = jax.random.uniform(kq, (C, head_size), jnp.float32, -init, init)
    wk = jax.random.uniform(kk, (C, head_size), jnp.float32, -init, init)
    wv = jax.random.uniform(kv, (C, head_size), jnp.float32, -init, init)

    out = jax.block_until_ready(head_forward(x, wq, wk, wv))
    ref = reference_head(x, wq, wk, wv)

    assert out.shape == (B, T, head_size)
    # bf16 MXU operands -> relax tolerance vs the f32 reference.
    assert jnp.allclose(out, ref, atol=2e-2, rtol=2e-2), (
        f"mismatch vs reference: max abs diff = {jnp.max(jnp.abs(out - ref))}")

    print("KERNEL_OK")
</pallas_src>

<mosaic_0001>
module attributes {stable_mosaic.version = 11 : i64} {
  func.func @_fused_head_kernel(%arg0: i32, %arg1: i32, %arg2: memref<1x16x384xbf16, #tpu.memory_space<vmem>>, %arg3: memref<384x384xbf16, #tpu.memory_space<vmem>>, %arg4: memref<1x16x64xf32, #tpu.memory_space<vmem>>) attributes {dimension_semantics = [#tpu.dimension_semantics<parallel>, #tpu.dimension_semantics<parallel>], iteration_bounds = array<i64: 2, 1>, scalar_prefetch = 0 : i64, scratch_operands = 0 : i64, tpu.core_type = #tpu.core_type<tc>, window_params = [{transform_indices = @transform_0, window_bounds = array<i64: 1, 16, 384>}, {pipeline_mode = #tpu.pipeline_mode<synchronous>, transform_indices = @transform_1, window_bounds = array<i64: 384, 384>}, {transform_indices = @transform_2, window_bounds = array<i64: 1, 16, 64>}]} {
    %c0 = arith.constant 0 : index
    %c0_0 = arith.constant 0 : index
    %c0_1 = arith.constant 0 : index
    %0 = vector.load %arg2[%c0, %c0_0, %c0_1] : memref<1x16x384xbf16, #tpu.memory_space<vmem>>, vector<1x16x384xbf16>
    %1 = vector.shape_cast %0 : vector<1x16x384xbf16> to vector<16x384xbf16>
    %c0_2 = arith.constant 0 : index
    %c0_3 = arith.constant 0 : index
    %2 = vector.load %arg3[%c0_2, %c0_3] : memref<384x384xbf16, #tpu.memory_space<vmem>>, vector<384x384xbf16>
    %cst = arith.constant dense<0.000000e+00> : vector<16x384xf32>
    %3 = tpu.matmul %1, %2, %cst {dimension_numbers = #tpu.dot_dimension_numbers<[1], [0], [0], [1], [0, 0, 1, 1], [], []>} : vector<16x384xbf16>, vector<384x384xbf16>, vector<16x384xf32> -> vector<16x384xf32>
    %4 = arith.truncf %3 : vector<16x384xf32> to vector<16x384xbf16>
    %5 = vector.extract_strided_slice %4 {offsets = [0, 0], sizes = [16, 128], strides = [1, 1]} : vector<16x384xbf16> to vector<16x128xbf16>
    %6 = vector.extract_strided_slice %4 {offsets = [0, 128], sizes = [16, 128], strides = [1, 1]} : vector<16x384xbf16> to vector<16x128xbf16>
    %7 = vector.extract_strided_slice %4 {offsets = [0, 256], sizes = [16, 128], strides = [1, 1]} : vector<16x384xbf16> to vector<16x128xbf16>
    %cst_4 = arith.constant dense<0.000000e+00> : vector<16x16xf32>
    %8 = tpu.matmul %5, %6, %cst_4 {dimension_numbers = #tpu.dot_dimension_numbers<[1], [1], [0], [0], [0, 0, 1, 0], [], []>} : vector<16x128xbf16>, vector<16x128xbf16>, vector<16x16xf32> -> vector<16x16xf32>
    %9 = tpu.iota {dimensions = array<i32: 0>} : vector<16x1xi32>
    %c0_i32 = arith.constant 0 : i32
    %10 = vector.broadcast %c0_i32 : i32 to vector<16x1xi32>
    %11 = arith.addi %10, %9 : vector<16x1xi32>
    %12 = tpu.iota {dimensions = array<i32: 1>} : vector<1x16xi32>
    %13 = vector.broadcast %12 : vector<1x16xi32> to vector<16x16xi32>
    %14 = vector.broadcast %11 : vector<16x1xi32> to vector<16x16xi32>
    %15 = arith.cmpi sle, %13, %14 : vector<16x16xi32>
    %cst_5 = arith.constant 0xFF800000 : f32
    %16 = vector.broadcast %cst_5 : f32 to vector<16x16xf32>
    %17 = arith.select %15, %8, %16 : vector<16x16xi1>, vector<16x16xf32>
    %cst_6 = arith.constant dense<0xFF800000> : vector<16xf32>
    %18 = vector.multi_reduction <maximumf>, %17, %cst_6 [1] : vector<16x16xf32> to vector<16xf32>
    %19 = vector.shape_cast %18 : vector<16xf32> to vector<16x1xf32>
    %20 = vector.broadcast %19 : vector<16x1xf32> to vector<16x16xf32>
    %21 = arith.subf %17, %20 : vector<16x16xf32>
    %22 = math.exp %21 : vector<16x16xf32>
    %cst_7 = arith.constant dense<0.000000e+00> : vector<16xf32>
    %23 = vector.multi_reduction <add>, %22, %cst_7 [1] : vector<16x16xf32> to vector<16xf32>
    %24 = vector.shape_cast %23 : vector<16xf32> to vector<16x1xf32>
    %25 = arith.truncf %22 : vector<16x16xf32> to vector<16x16xbf16>
    %cst_8 = arith.constant dense<0.000000e+00> : vector<16x128xf32>
    %26 = tpu.matmul %25, %7, %cst_8 {dimension_numbers = #tpu.dot_dimension_numbers<[1], [0], [0], [1], [0, 0, 1, 1], [], []>} : vector<16x16xbf16>, vector<16x128xbf16>, vector<16x128xf32> -> vector<16x128xf32>
    %27 = vector.extract_strided_slice %26 {offsets = [0, 0], sizes = [16, 64], strides = [1, 1]} : vector<16x128xf32> to vector<16x64xf32>
    %28 = vector.broadcast %24 : vector<16x1xf32> to vector<16x64xf32>
    %29 = arith.divf %27, %28 : vector<16x64xf32>
    %c0_9 = arith.constant 0 : index
    %c0_10 = arith.constant 0 : index
    %c0_11 = arith.constant 0 : index
    %30 = vector.load %arg4[%c0_9, %c0_10, %c0_11] : memref<1x16x64xf32, #tpu.memory_space<vmem>>, vector<1x16x64xf32>
    %31 = vector.shape_cast %30 : vector<1x16x64xf32> to vector<16x64xf32>
    %32 = vector.shape_cast %29 : vector<16x64xf32> to vector<1x16x64xf32>
    tpu.vector_store %arg4[%c0_9, %c0_10, %c0_11], %32 {strides = array<i32>} : memref<1x16x64xf32, #tpu.memory_space<vmem>>, vector<1x16x64xf32>,
    return
  }
  func.func @transform_0(%arg0: i32, %arg1: i32) -> (i32, i32, i32) {
    %c0_i32 = arith.constant 0 : i32
    %c0_i32_0 = arith.constant 0 : i32
    %c0_i32_1 = arith.constant 0 : i32
    return %arg0, %c0_i32, %c0_i32_0 : i32, i32, i32
  }
  func.func @transform_1(%arg0: i32, %arg1: i32) -> (i32, i32) {
    %c0_i32 = arith.constant 0 : i32
    %c0_i32_0 = arith.constant 0 : i32
    %c0_i32_1 = arith.constant 0 : i32
    return %c0_i32, %c0_i32_0 : i32, i32
  }
  func.func @transform_2(%arg0: i32, %arg1: i32) -> (i32, i32, i32) {
    %c0_i32 = arith.constant 0 : i32
    %c0_i32_0 = arith.constant 0 : i32
    return %arg0, %arg1, %c0_i32 : i32, i32, i32
  }
}

</mosaic_0001>

<bundles_post_ra>
// kernel: head_forward.1
= control target key start
LH: loop header
LB: loop body
LE: loop exit
PB: predicated region body
PF: predicated region fallthrough
CT: control target
= control target key end

     0   :  { %7 = vsyncpa [#allocation3], 0  ;;  %s1826_s0 = inlined_call_operand.vmem [shape: bf16[2,16,384], index: 0, kind: input, shape index: {}]   ;;  %s1827_s1 = inlined_call_operand.vmem [shape: bf16[384,384], index: 1, kind: input, shape index: {}]   ;;  %s1828_s2 = inlined_call_operand.hbm [shape: f32[2,16,64], index: 2, kind: output, shape index: {}]  }
   0x1   :  { %9 = vsyncpa [#allocation3 + $0x1], 0  ;;  %s1469_s9 = smov 0   ;;  %s1471_s10 = smov 0  }
   0x2   :  { %s1473_s11 = smov 0   ;;  %s1475_s12 = smov 0  }
   0x3   :  { %s1477_s13 = smov 0   ;;  %s1479_s14 = smov 0  }
   0x4 LB: > { %s1039_s15 = sadd.s32 4294967295, %s1446_s14   ;;  %s1040_s16 = sadd.s32 4294967294, %s1446_s14   ;;  %s1446_s14 = sphi %s1479_s14, %s15_s14   ;;  %s1442_s13 = sphi %s1477_s13, %s1835_s13   ;;  %s1438_s12 = sphi %s1475_s12, %s1834_s12   ;;  %s1434_s11 = sphi %s1473_s11, %s1833_s11   ;;  %s1430_s10 = sphi %s1471_s10, %s1832_s10   ;;  %s1426_s9 = sphi %s1469_s9, %s1831_s9  }
   0x5   : > { %s27_s17 = sadd.s32 1, %s1442_s13  ;;  %s83_s18 = sadd.s32 1, %s1434_s11 }
   0x6   : > { %p29_p0 = scmp.ge.s32.totalorder %s27_s17, 2  ;;  %p93_p1 = scmp.ne.s32.totalorder %s1434_s11, %s1430_s10 }
   0x7   : > { %p94_p2 = scmp.eq.s32.totalorder %s1039_s15, 1  ;;  %p99_p3 = scmp.ne.s32.totalorder %s1430_s10, %s1426_s9 }
   0x8   : > { %s1837_s17 = smov (%p29_p0, %s27_s17), 0  ;;  %p100_p5 = scmp.eq.s32.totalorder %s1040_s16, 1 }
   0x9   : > { %p1509_p4 = por %p94_p2, %p93_p1  ;;  %s78_s20 = ssub.s32 %s1442_s13, %s1837_s17 }
   0xa   : > { %p1043_p6 = scmp.ge.s32.totalorder %s1446_s14, 1  ;;  %p81_p7 = scmp.eq.s32.totalorder %s78_s20, 0 }
   0xb   : > { %p1516_p8 = por %p100_p5, %p99_p3  ;;  %p129_p9 = scmp.lt.s32.totalorder %s1446_s14, 3 }
   0xc   : > { %s1522_s22 = scalar_select %p81_p7, %s1434_s11, %s83_s18  }
   0xd   : > { %p130_p10 = pnand %p1043_p6, %p129_p9 }
   0xe   : > { %v1260_v0 = vld [vmem:[%s1827_s1 + $0x4] ss:$12 sps:$4 sm:$0xff] (!%p130_p10)   ;;  %v1262_v1 = vld [vmem:[%s1827_s1] ss:$12 sps:$4 sm:$0xff] (!%p130_p10)   ;;  %v1263_v2 = vld [vmem:[%s1827_s1 + $0x1c] ss:$12 sps:$4 sm:$0xff] (!%p130_p10)  }
   0xf   : > { %133 = sbr.rel (%p130_p10) target bundleno = 943 (0x3af), region = 28  ;;  %658 = vmatprep.subr.bf16.mxu0 (!%p130_p10), %v1260_v0  ;;  %v1265_v3 = vld [vmem:[%s1827_s1 + $0x18] ss:$12 sps:$4 sm:$0xff] (!%p130_p10)   ;;  %v1266_v4 = vld [vmem:[%s1827_s1 + $0x34] ss:$12 sps:$4 sm:$0xff] (!%p130_p10)   ;;  %p151_p11 = scmp.lt.s32.totalorder (!%p130_p10), %s1438_s12, 1 }
  0x10   : > { %659 = vmatpush1.bf16.msra.mxu0 (!%p130_p10), %v1262_v1  ;;  %v1268_v5 = vld [vmem:[%s1827_s1 + $0x30] ss:$12 sps:$4 sm:$0xff] (!%p130_p10)   ;;  %v1269_v6 = vld [vmem:[%s1827_s1 + $0x4c] ss:$12 sps:$4 sm:$0xff] (!%p130_p10)   ;;  %v1271_v7 = vld [vmem:[%s1827_s1 + $0x48] ss:$12 sps:$4 sm:$0xff] (!%p130_p10)  }
  0x11   : > { %660 = vmatprep.subr.bf16.mxu0 (!%p130_p10), %v1263_v2  ;;  %v1272_v8 = vld [vmem:[%s1827_s1 + $0x64] ss:$12 sps:$4 sm:$0xff] (!%p130_p10)   ;;  %v1274_v9 = vld [vmem:[%s1827_s1 + $0x60] ss:$12 sps:$4 sm:$0xff] (!%p130_p10)   ;;  %v1275_v10 = vld [vmem:[%s1827_s1 + $0x7c] ss:$12 sps:$4 sm:$0xff] (!%p130_p10)  }
  0x12   : > { %v1277_v11 = vld [vmem:[%s1827_s1 + $0x78] ss:$12 sps:$4 sm:$0xff] (!%p130_p10)   ;;  %v1278_v12 = vld [vmem:[%s1827_s1 + $0x94] ss:$12 sps:$4 sm:$0xff] (!%p130_p10)   ;;  %v1280_v14 = vld [vmem:[%s1827_s1 + $0x90] ss:$12 sps:$4 sm:$0xff] (!%p130_p10)  }
  0x13   : > { %v1281_v15 = vld [vmem:[%s1827_s1 + $0xac] ss:$12 sps:$4 sm:$0xff] (!%p130_p10)   ;;  %v1283_v16 = vld [vmem:[%s1827_s1 + $0xa8] ss:$12 sps:$4 sm:$0xff] (!%p130_p10)   ;;  %v1284_v17 = vld [vmem:[%s1827_s1 + $0xc4] ss:$12 sps:$4 sm:$0xff] (!%p130_p10)  }
  0x14   : > { %661 = vmatpush1.bf16.msra.mxu0 (!%p130_p10), %v1265_v3  ;;  %v1286_v18 = vld [vmem:[%s1827_s1 + $0xc0] ss:$12 sps:$4 sm:$0xff] (!%p130_p10)   ;;  %v1287_v19 = vld [vmem:[%s1827_s1 + $0xdc] ss:$12 sps:$4 sm:$0xff] (!%p130_p10)   ;;  %v1289_v20 = vld [vmem:[%s1827_s1 + $0xd8] ss:$12 sps:$4 sm:$0xff] (!%p130_p10)  }
  0x15   : > { %662 = vmatprep.subr.bf16.mxu0 (!%p130_p10), %v1266_v4  ;;  %v1290_v21 = vld [vmem:[%s1827_s1 + $0xf4] ss:$12 sps:$4 sm:$0xff] (!%p130_p10)   ;;  %v1292_v24 = vld [vmem:[%s1827_s1 + $0xf0] ss:$12 sps:$4 sm:$0xff] (!%p130_p10)   ;;  %v1340_v27 = vld [vmem:[%s1827_s1 + $0xf8] ss:$12 sps:$4 sm:$0xff] (!%p130_p10)  }
  0x16   : > { %s152_s18 = scalar_select %p151_p11, %s1438_s12, 1  ;;  %v1336_v22 = vld [vmem:[%s1827_s1 + $0xc8] ss:$12 sps:$4 sm:$0xff]   ;;  %v1338_v25 = vld [vmem:[%s1827_s1 + $0xe0] ss:$12 sps:$4 sm:$0xff]   ;;  %v1448_v55 = vmov 0  }
  0x17   : > { %v1337_v23 = vld [vmem:[%s1827_s1 + $0x8] ss:$12 sps:$4 sm:$0xff]   ;;  %1128 = vmatprep.subr.bf16.mxu1 %v1336_v22  ;;  %v1339_v26 = vld [vmem:[%s1827_s1 + $0x20] ss:$12 sps:$4 sm:$0xff]   ;;  %v1341_v30 = vld [vmem:[%s1827_s1 + $0x38] ss:$12 sps:$4 sm:$0xff]  }
  0x18   : > { %663 = vmatpush1.bf16.msra.mxu0 %v1268_v5  ;;  %s1199_s26 = smul.u32 24, %s152_s18  ;;  %1129 = vmatpush3.bf16.msra.mxu1 %v1337_v23  ;;  %v1293_v28 = vld [vmem:[%s1827_s1 + $0x10c] ss:$12 sps:$4 sm:$0xff]   ;;  %v1295_v29 = vld [vmem:[%s1827_s1 + $0x108] ss:$12 sps:$4 sm:$0xff]   ;;  %v1449_v57 = vmov 0.0  }
  0x19   : > { %664 = vmatprep.subr.bf16.mxu0 %v1269_v6  ;;  %1130 = vmatprep.subr.bf16.mxu1 %v1338_v25  ;;  %v1342_v31 = vld [vmem:[%s1827_s1 + $0x110] ss:$12 sps:$4 sm:$0xff]   ;;  %v1298_v33 = vld [vmem:[%s1827_s1 + $0x120] ss:$12 sps:$4 sm:$0xff]   ;;  %v1344_v35 = vld [vmem:[%s1827_s1 + $0x128] ss:$12 sps:$4 sm:$0xff]  }
  0x1a   : > { %s1565_s5 = scalar_lea.vmem %s1826_s0, %s1199_s26  ;;  %v1296_v32 = vld [vmem:[%s1827_s1 + $0x124] ss:$12 sps:$4 sm:$0xff]   ;;  %v1299_v36 = vld [vmem:[%s1827_s1 + $0x13c] ss:$12 sps:$4 sm:$0xff]   ;;  %v1346_v39 = vld [vmem:[%s1827_s1 + $0x140] ss:$12 sps:$4 sm:$0xff]  }
  0x1b   : > { %v1310_v13 = vld [vmem:[%s1565_s5 + $0x4] ss:$12 sps:$4 sm:$0xff]   ;;  %v1345_v38 = vld [vmem:[%s1827_s1 + $0x68] ss:$12 sps:$4 sm:$0xff]   ;;  %v1347_v42 = vld [vmem:[%s1827_s1 + $0x80] ss:$12 sps:$4 sm:$0xff]  }
  0x1c   : > { %665 = vmatpush1.bf16.msra.mxu0 %v1271_v7  ;;  %690 = vmatprep.mubr.bf16.mxu0 %v1310_v13  ;;  %v1343_v34 = vld [vmem:[%s1827_s1 + $0x50] ss:$12 sps:$4 sm:$0xff]   ;;  %v1301_v37 = vld [vmem:[%s1827_s1 + $0x138] ss:$12 sps:$4 sm:$0xff]   ;;  %v1302_v40 = vld [vmem:[%s1827_s1 + $0x154] ss:$12 sps:$4 sm:$0xff]  }
  0x1d   : > { %666 = vmatprep.subr.bf16.mxu0 %v1272_v8  ;;  %776 = vmatprep.mubr.bf16.mxu1 %v1310_v13  ;;  %v1304_v41 = vld [vmem:[%s1827_s1 + $0x150] ss:$12 sps:$4 sm:$0xff]   ;;  %v1348_v43 = vld [vmem:[%s1827_s1 + $0x158] ss:$12 sps:$4 sm:$0xff]   ;;  %v1307_v46 = vld [vmem:[%s1827_s1 + $0x168] ss:$12 sps:$4 sm:$0xff]  }
  0x1e   : > { %1131 = vmatpush3.bf16.msra.mxu1 %v1339_v26  ;;  %v1305_v44 = vld [vmem:[%s1827_s1 + $0x16c] ss:$12 sps:$4 sm:$0xff]   ;;  %v1350_v47 = vld [vmem:[%s1827_s1 + $0x170] ss:$12 sps:$4 sm:$0xff]   ;;  %v1352_v53 = vld [vmem:[%s1827_s1 + $0x188] ss:$12 sps:$4 sm:$0xff]  }
  0x1f   : > { %1132 = vmatprep.subr.bf16.mxu1 %v1340_v27  ;;  %v1349_v45 = vld [vmem:[%s1827_s1 + $0x98] ss:$12 sps:$4 sm:$0xff]   ;;  %v1308_v49 = vld [vmem:[%s1565_s5] ss:$12 sps:$4 sm:$0xff]   ;;  %v1351_v50 = vld [vmem:[%s1827_s1 + $0xb0] ss:$12 sps:$4 sm:$0xff]  }
  0x20   : > { %667 = vmatpush1.bf16.msra.mxu0 %v1274_v9  ;;  %v1313_v48 = vld [vmem:[%s1827_s1 + $0x184] ss:$12 sps:$4 sm:$0xff]   ;;  %v1311_v51 = vld [vmem:[%s1827_s1 + $0x180] ss:$12 sps:$4 sm:$0xff]   ;;  %v1316_v52 = vld [vmem:[%s1827_s1 + $0x19c] ss:$12 sps:$4 sm:$0xff]  }
  0x21   : > { %668 = vmatprep.subr.bf16.mxu0 %v1275_v10  ;;  %v1314_v54 = vld [vmem:[%s1827_s1 + $0x198] ss:$12 sps:$4 sm:$0xff]   ;;  %v1319_v56 = vld [vmem:[%s1827_s1 + $0x1b4] ss:$12 sps:$4 sm:$0xff]   ;;  %vm1450_vm0 = vmmov 0   ;;  %vm879_vm2 = vcmask 130048  }
  0x22   : > { %1133 = vmatpush3.bf16.msra.mxu1 %v1341_v30  ;;  %v1353_v58 = vld [vmem:[%s1827_s1 + $0x1a0] ss:$12 sps:$4 sm:$0xff]   ;;  %v1317_v59 = vld [vmem:[%s1827_s1 + $0x1b0] ss:$12 sps:$4 sm:$0xff]   ;;  %v1354_v61 = vld [vmem:[%s1827_s1 + $0x1b8] ss:$12 sps:$4 sm:$0xff]  }
  0x23   : > { %1134 = vmatprep.subr.bf16.mxu1 %v1342_v31  ;;  %v1322_v60 = vld [vmem:[%s1827_s1 + $0x1cc] ss:$12 sps:$4 sm:$0xff]   ;;  %v1320_v62 = vld [vmem:[%s1827_s1 + $0x1c8] ss:$12 sps:$4 sm:$0xff]   ;;  %v1325_v63 = vld [vmem:[%s1827_s1 + $0x1e4] ss:$12 sps:$4 sm:$0xff]  }
  0x24   : > { %669 = vmatpush1.bf16.msra.mxu0 %v1277_v11  ;;  %v1355_v0 = vld [vmem:[%s1827_s1 + $0x1d0] ss:$12 sps:$4 sm:$0xff]   ;;  %v1323_v1 = vld [vmem:[%s1827_s1 + $0x1e0] ss:$12 sps:$4 sm:$0xff]   ;;  %v1356_v3 = vld [vmem:[%s1827_s1 + $0x1e8] ss:$12 sps:$4 sm:$0xff]  }
  0x25   : > { %670 = vmatprep.subr.bf16.mxu0 %v1278_v12  ;;  %v1328_v2 = vld [vmem:[%s1827_s1 + $0x1fc] ss:$12 sps:$4 sm:$0xff]   ;;  %v1326_v4 = vld [vmem:[%s1827_s1 + $0x1f8] ss:$12 sps:$4 sm:$0xff]   ;;  %v1331_v5 = vld [vmem:[%s1827_s1 + $0x214] ss:$12 sps:$4 sm:$0xff]  }
  0x26   : > { %1135 = vmatpush3.bf16.msra.mxu1 %v1343_v34  ;;  %v1357_v6 = vld [vmem:[%s1827_s1 + $0x200] ss:$12 sps:$4 sm:$0xff]   ;;  %v1329_v7 = vld [vmem:[%s1827_s1 + $0x210] ss:$12 sps:$4 sm:$0xff]   ;;  %v1358_v9 = vld [vmem:[%s1827_s1 + $0x218] ss:$12 sps:$4 sm:$0xff]  }
  0x27   : > { %1136 = vmatprep.subr.bf16.mxu1 %v1344_v35  ;;  %v1334_v8 = vld [vmem:[%s1827_s1 + $0x22c] ss:$12 sps:$4 sm:$0xff]   ;;  %v1332_v10 = vld [vmem:[%s1827_s1 + $0x228] ss:$12 sps:$4 sm:$0xff]   ;;  %v1359_v12 = vld [vmem:[%s1827_s1 + $0x230] ss:$12 sps:$4 sm:$0xff]  }
  0x28   : > { %671 = vmatpush1.bf16.msra.mxu0 %v1280_v14  ;;  %v1335_v11 = vld [vmem:[%s1565_s5 + $0x8] ss:$12 sps:$4 sm:$0xff]   ;;  %s148_s5 = sand.u32 1, %s1430_s10   ;;  %s1127_s16 = sshll.u32 %s1438_s12, 8  ;;  %vm947_vm4 = vcmask 523264  }
  0x29   : > { %672 = vmatprep.subr.bf16.mxu0 %v1281_v15  ;;  %s1044_s7 = sshll.u32 %s148_s5, 4  ;;  %s1778_s23 = scalar_lea.hbm %s1828_s2, %s1127_s16 }
  0x2a   : > { %1137 = vmatpush3.bf16.msra.mxu1 %v1345_v38  ;;  %s150_s8 = scalar_lea.vmem [#allocation2], %s1044_s7  ;;  %s1780_s12 = scalar_lea.sflag [#allocation3], %s148_s5 }
  0x2b   : > { %1138 = vmatprep.subr.bf16.mxu1 %v1346_v39  ;;  %s966_s15 = sshll.u32 %s150_s8, 4  ;;  %s1451_s25 = smov [#allocation2]   ;;  %s1773_s15 = int_to_ptr.vmem [resolvable:$true] %s966_s15 }
  0x2c   : > { %673 = vmatpush1.bf16.msra.mxu0 %v1283_v16  ;;  %s1368_s24 = scalar_lea.vmem %s1773_s15, 256  ;;  %s1372_s26 = sshll.u32 %s1451_s25, 4  ;;  %s1373_s26 = int_to_ptr.vmem [resolvable:$false] %s1372_s26 }
  0x2d   : > { %674 = vmatprep.subr.bf16.mxu0 %v1284_v17  ;;  %p1369_p12 = scmp.ne.s32.totalorder %s1773_s15, %s1368_s24  ;;  %s1374_s27 = scalar_lea.vmem %s1373_s26, 512 }
  0x2e   : > { %1139 = vmatpush3.bf16.msra.mxu1 %v1347_v42  ;;  %p1375_p1 = scmp.lt.s32.totalorder %s1773_s15, %s1373_s26  ;;  %p1376_p2 = scmp.lt.s32.totalorder %s1374_s27, %s1368_s24 }
  0x2f   : > { %1140 = vmatprep.subr.bf16.mxu1 %v1348_v43  ;;  %p1370_p13 = pnand %p1369_p12, %p1509_p4 }
  0x30   : > { %675 = vmatpush1.bf16.msra.mxu0 %v1286_v18  ;;  %p1377_p3 = por %p1376_p2, %p1375_p1 }
  0x31   : > { %676 = vmatprep.subr.bf16.mxu0 %v1287_v19  ;;  %p1371_p0 = pneg %p1370_p13 }
  0x32   : > { %1141 = vmatpush3.bf16.msra.mxu1 %v1349_v45 }
  0x33   : > { %1142 = vmatprep.subr.bf16.mxu1 %v1350_v47  ;;  %p1378_p5 = pnand %p1377_p3, %p1371_p0 }
  0x34   : > { %677 = vmatpush1.bf16.msra.mxu0 %v1289_v20 }
  0x35   : > { %678 = vmatprep.subr.bf16.mxu0 %v1290_v21 }
  0x36   : > { %1143 = vmatpush3.bf16.msra.mxu1 %v1351_v50 }
  0x37   : > { %1163 = vmatprep.subr.bf16.mxu1 %v1449_v57 }
  0x38   : > { %679 = vmatpush1.bf16.msra.mxu0 %v1292_v24 }
  0x39   : > { %680 = vmatprep.subr.bf16.mxu0 %v1293_v28  ;;  %777 = vmatmul.mubr.bf16.vlgmr.msra.gmra.mrb[0].mxu1 %v1308_v49 }
  0x3a   : > { %1164 = vmatpush3.bf16.msra.mxu1 %v1352_v53  ;;  %1179 = vmatprep.mubr.msk.bf16.mxu1 %vm1450_vm0, %v1449_v57 }
  0x3b   : > { %1165 = vmatprep.subr.bf16.mxu1 %v1449_v57 }
  0x3c   : > { %681 = vmatpush1.bf16.msra.mxu0 %v1295_v29 }
  0x3d   : > { %682 = vmatprep.subr.bf16.mxu0 %v1296_v32  ;;  %v870_v32 = vlaneseq }
  0x3e   : > { %1166 = vmatpush3.bf16.msra.mxu1 %v1353_v58 }
  0x3f   : > { %1167 = vmatprep.subr.bf16.mxu1 %v1449_v57  ;;  %v874_v34 = vand.u32 127, %v870_v32 }
  0x40   : > { %683 = vmatpush1.bf16.msra.mxu0 %v1298_v33  ;;  %v871_v33 = vshrl.u32 %v870_v32, 7 }
  0x41   : > { %684 = vmatprep.subr.bf16.mxu0 %v1299_v36 }
  0x42   : > { %1168 = vmatpush3.bf16.msra.mxu1 %v1354_v61  ;;  %v872_v35 = vadd.s32 8, %v871_v33  ;;  %vm875_vm1 = vcmp.le.s32.totalorder %v874_v34, %v871_v33 }
  0x43   : > { %1169 = vmatprep.subr.bf16.mxu1 %v1449_v57 }
  0x44   : > { %685 = vmatpush1.bf16.msra.mxu0 %v1301_v37  ;;  %vm876_vm3 = vcmp.le.s32.totalorder %v874_v34, %v872_v35 }
  0x45   : > { %686 = vmatprep.subr.bf16.mxu0 %v1302_v40 }
  0x46   : > { %1170 = vmatpush3.bf16.msra.mxu1 %v1355_v0 }
  0x47   : > { %1171 = vmatprep.subr.bf16.mxu1 %v1449_v57 }
  0x48   : > { %687 = vmatpush1.bf16.msra.mxu0 %v1304_v41 }
  0x49   : > { %688 = vmatprep.subr.bf16.mxu0 %v1305_v44 }
  0x4a   : > { %1172 = vmatpush3.bf16.msra.mxu1 %v1356_v3 }
  0x4b   : > { %1173 = vmatprep.subr.bf16.mxu1 %v1449_v57 }
  0x4c   : > { %689 = vmatpush1.bf16.msra.mxu0 %v1307_v46 }
  0x4d   : > { %701 = vmatprep.subr.bf16.mxu0 %v1313_v48 }
  0x4e   : > { %1174 = vmatpush3.bf16.msra.mxu1 %v1357_v6 }
  0x4f   : > { %691 = vmatmul.mubr.bf16.vlgmr.msra.gmra.mrb[0].mxu0 %v1308_v49  ;;  %1175 = vmatprep.subr.bf16.mxu1 %v1449_v57 }
  0x50   : > { %702 = vmatpush1.bf16.msra.mxu0 %v1311_v51  ;;  %733 = vmatprep.mubr.bf16.mxu0 %v1448_v55 }
  0x51   : > { %703 = vmatprep.subr.bf16.mxu0 %v1316_v52 }
  0x52   : > { %1176 = vmatpush3.bf16.msra.mxu1 %v1358_v9 }
  0x53   : > { %1177 = vmatprep.subr.bf16.mxu1 %v1449_v57 }
  0x54   : > { %704 = vmatpush1.bf16.msra.mxu0 %v1314_v54 }
  0x55   : > { %705 = vmatprep.subr.bf16.mxu0 %v1319_v56 }
  0x56   : > { %1178 = vmatpush3.bf16.msra.mxu1 %v1359_v12 }
  0x57   : > { %1183 = vmatprep.subr.bf16.mxu1 %v1449_v57 }
  0x58   : > { %706 = vmatpush1.bf16.msra.mxu0 %v1317_v59 }
  0x59   : > { %707 = vmatprep.subr.bf16.mxu0 %v1322_v60  ;;  %1180 = vmatmul.mubr.bf16.vlgmr.msra.gmra.mrb[4].mxu1 %v1335_v11 }
  0x5a   : > { %1185 = vmatprep.mubr.msk.bf16.mxu1 %vm1450_vm0, %v1449_v57 }
  0x5c   : > { %708 = vmatpush1.bf16.msra.mxu0 %v1320_v62 }
  0x5d   : > { %709 = vmatprep.subr.bf16.mxu0 %v1325_v63 }
  0x60   : > { %710 = vmatpush1.bf16.msra.mxu0 %v1323_v1 }
  0x61   : > { %711 = vmatprep.subr.bf16.mxu0 %v1328_v2 }
  0x64   : > { %712 = vmatpush1.bf16.msra.mxu0 %v1326_v4 }
  0x65   : > { %713 = vmatprep.subr.bf16.mxu0 %v1331_v5 }
  0x68   : > { %714 = vmatpush1.bf16.msra.mxu0 %v1329_v7 }
  0x69   : > { %715 = vmatprep.subr.bf16.mxu0 %v1334_v8 }
  0x6c   : > { %716 = vmatpush1.bf16.msra.mxu0 %v1332_v10 }
  0x6f   : > { %734 = vmatmul.mubr.bf16.vlgmr.msra.gmra.mrb[0].mxu0 %v1335_v11 }
 0x10c   : > { %v1144_v13 = vpop.f32.mrb[0].mxu1 }
 0x10d   : > { %v1145_v14 = vpop.f32.mrb[1].mxu1 }
 0x10e   : > { %v1146_v15 = vadd.f32 %v1145_v14, %v1144_v13  ;;  %v1147_v16 = vpop.f32.mrb[2].mxu1 }
 0x10f   : > { %v1148_v17 = vpop.f32.mrb[3].mxu1 }
 0x110   : > { %v1149_v18 = vadd.f32 %v1148_v17, %v1147_v16 }
 0x12c   : > { %v819_v24 = vpop.f32.mrb[4].mxu1 }
 0x12d   : > { %v820_v26 = vadd.f32 %v1146_v15, %v819_v24  ;;  %v1181_v27 = vpop.f32.mrb[5].mxu1 }
 0x12e   : > { %v822_v28 = vpop.f32.mrb[6].mxu1 }
 0x12f   : > { %v823_v29 = vadd.f32 %v1149_v18, %v822_v28  ;;  %v1182_v30 = vpop.f32.mrb[7].mxu1 }
 0x131   : > { %v828_v31 = vpack.c.bf16 %v823_v29, %v820_v26 }
 0x142   : > { %v735_v19 = vpop.f32.mrb[0].mxu0 }
 0x143   : > { %v737_v20 = vpop.f32.mrb[1].mxu0 }
 0x144   : > { %v739_v21 = vpop.f32.mrb[2].mxu0 }
 0x145   : > { %v826_v22 = vpack.c.bf16 %v739_v21, %v735_v19  ;;  %v741_v23 = vpop.f32.mrb[3].mxu0 }
 0x146   : > { %v827_v25 = vpack.c.bf16 %v741_v23, %v737_v20 }
 0x148   : > { %1184 = vmatpush3.bf16.xpose.msra.mxu1 %v827_v25 }
 0x149   : > { %1189 = vmatprep.subr.bf16.mxu1 %v1449_v57 }
 0x14f   : > { %1186 = vmatmul.mubr.bf16.vlgmr.msra.gmra.mrb[8].mxu1 %v826_v22 }
 0x150   : > { %1190 = vmatpush3.bf16.msra.mxu1 %v828_v31  ;;  %1191 = vmatprep.mubr.msk.bf16.mxu1 %vm1450_vm0, %v1449_v57 }
 0x222   : > { %v863_v36 = vpop.f32.mrb[8].mxu1 }
 0x223   : > { %v877_v37 = vsel %vm875_vm1, %v863_v36, -inf  ;;  %v1187_v38 = vpop.f32.mrb[9].mxu1 }
 0x224   : > { %v866_v39 = vpop.f32.mrb[10].mxu1  ;;  %v880_v40 = vsel %vm879_vm2, %v877_v37, -inf }
 0x225   : > { %v878_v41 = vsel %vm876_vm3, %v866_v39, -inf  ;;  %881 = vmax.xlane.f32.xlu0 %v880_v40  ;;  %v1188_v42 = vpop.f32.mrb[11].mxu1 }
 0x226   : > { %v883_v43 = vsel %vm879_vm2, %v878_v41, -inf }
 0x229   : > { %884 = vmax.xlane.f32.xlu0 %v883_v43 }
 0x2b2   : > { %v882_v44 = vpop.xlane.xlu0 %881 }
 0x2b3   : > { %v886_v45 = vsub.f32 %v877_v37, %v882_v44 }
 0x2b5   : > { %v888_v46 = vmul.f32 1.442695, %v886_v45 }
 0x2b6   : > { %v885_v47 = vpop.xlane.xlu0 %884 }
 0x2b7   : > { %1360 = vpow2.f32 %v888_v46  ;;  %v887_v48 = vsub.f32 %v878_v41, %v885_v47 }
 0x2b9   : > { %v890_v49 = vmul.f32 1.442695, %v887_v48 }
 0x2bb   : > { %1362 = vpow2.f32 %v890_v49 }
 0x2c1   : > { %v1361_v50 = vpop.eup %1360 }
 0x2c2   : > { %v892_v51 = vsel %vm879_vm2, %v1361_v50, 0.0 }
 0x2c3   : > { %893 = vadd.xlane.f32.xlu1 %v892_v51 }
 0x2c5   : > { %v1363_v52 = vpop.eup %1362 }
 0x2c6   : > { %v895_v53 = vsel %vm879_vm2, %v1363_v52, 0.0  ;;  %v898_v54 = vpack.c.bf16 %v1363_v52, %v1361_v50 }
 0x2c7   : > { %896 = vadd.xlane.f32.xlu1 %v895_v53 }
 0x2c8   : > { %1192 = vmatmul.mubr.msk.bf16.vlgmr.msra.gmra.mrb[12].mxu1 %vm879_vm2, %v898_v54 }
 0x350   : > { %v894_v55 = vpop.xlane.xlu1 %893 }
 0x351   : > { %1364 = vrcp.f32 %v894_v55 }
 0x354   : > { %v897_v56 = vpop.xlane.xlu1 %896 }
 0x355   : > { %1366 = vrcp.f32 %v897_v56 }
 0x35b   : > { %v1365_v57 = vpop.eup %1364 }
 0x35f   : > { %v1367_v61 = vpop.eup %1366 }
 0x39b   : > { %v936_v58 = vpop.f32.mrb[12].mxu1 }
 0x39c   : > { %v944_v59 = vmul.f32 %v1365_v57, %v936_v58  ;;  %v1193_v60 = vpop.f32.mrb[13].mxu1 }
 0x39d   : > { %v939_v62 = vpop.f32.mrb[14].mxu1 }
 0x39e   : > { %948 = vst.msk [vmem:[%s150_s8] sm:$0xff] %vm947_vm4, %v944_v59  ;;  %v946_v63 = vmul.f32 %v1367_v61, %v939_v62  ;;  %v1194_v0 = vpop.f32.mrb[15].mxu1 }
 0x3a0   : > { %949 = vst.msk [vmem:[%s150_s8 + $0x8] sm:$0xff] %vm947_vm4, %v946_v63 }
 0x3a1   : > { %1381 = shalt.err (!%p1378_p5)
}
 0x3a2   : > { %s1382_s28 = scalar_lea.hbm %s1778_s23, 256  ;;  %s1386_s3 = scalar_lea.hbm %s1828_s2, 512 }
 0x3a3   : > { %p1383_p6 = scmp.ne.s32.totalorder %s1778_s23, %s1382_s28  ;;  %p1387_p10 = scmp.lt.u32.totalorder %s1778_s23, %s1828_s2 }
 0x3a4   : > { %p1388_p11 = scmp.lt.u32.totalorder %s1386_s3, %s1382_s28  ;;  %p1390_p13 = scmp.lt.u32.totalorder %s1382_s28, %s1778_s23 }
 0x3a5   : > { %p1384_p7 = pnand %p1383_p6, %p1509_p4 }
 0x3a6   : > { %p1389_p12 = por %p1388_p11, %p1387_p10 }
 0x3a7   : > { %p1385_p9 = pneg %p1384_p7 }
 0x3a8   : > { %p1391_p0 = por %p1390_p13, %p1389_p12 }
 0x3aa   : > { %p1392_p1 = pnand %p1391_p0, %p1385_p9 }
 0x3ac   : > { %1395 = shalt.err (!%p1392_p1)
}
 0x3ad   : > { %s1452_s5 = smov 128   ;;  %s1453_s7 = smov 8  }
 0x3ae   : > { %1200 = dma.vmem_to_hbm [thread:$0]  (%p1509_p4), %s1773_s15, 256, %s1778_s23, %s1780_s12, %s1452_s5, %s1452_s5, %s1453_s7  }
 0x3af PF: > { %p1206_p2 = scmp.ge.s32.totalorder %s1446_s14, 2  ;;  %s981_s8 = sand.u32 1, %s1426_s9  }
 0x3b0   : > { %s982_s16 = scalar_lea.sflag [#allocation3], %s981_s8 }
 0x3b1   : > { %p1203_p3 = pnand %p1206_p2, %p1516_p8 }
 0x3b3   : > { %1421 = dma.done.wait (!%p1203_p3), %s982_s16, 256  }
 0x3b4   : > { %1423 = vsyncadd (!%p1203_p3), %s982_s16, 4294967040  ;;  %s15_s14 = sadd.s32 1, %s1446_s14   ;;  %s1831_s9 = smov %s1430_s10 }
 0x3b5   : > { %p12_p5 = scmp.ge.s32.totalorder %s15_s14, 4   ;;  %s1832_s10 = smov %s1434_s11 }
 0x3b6   : > { %s1833_s11 = smov %s1522_s22  ;;  %s1834_s12 = smov %s1442_s13 }
 0x3b7   : > { %s1835_s13 = smov %s1837_s17  ;;  %14 = sbr.rel (!%p12_p5) target bundleno = 4 (0x4), region = 63 }
 0x3be   :  { %987 = vsyncpa [#allocation3], 1 }
 0x3bf   :  { %989 = vsyncpa [#allocation3 + $0x1], 1 }

</bundles_post_ra>
